<compile_context>
chip_gen: v6e
topology: v6e:2x2x1
jax: 0.10.0
libtpu: 0.0.40
codegen_flags: <defaults>
</compile_context>

<pallas_src>
import jax
import jax.numpy as jnp
from jax.experimental import pallas as pl
from jax.experimental.pallas import tpu as pltpu


def _round_up(x: int, m: int) -> int:
    return ((x + m - 1) // m) * m


def _vmem_budget_bytes() -> int:
    """Per-generation scoped-VMEM budget for the kernel."""
    try:
        kind = jax.devices()[0].device_kind.lower()
    except Exception:
        kind = ""
    if "v7" in kind:
        # v7x: 64 MiB physical per TensorCore -> stay conservative.
        return 32 * 1024 * 1024
    if "v5" in kind or "v6" in kind:
        # v5e / v6e: 128 MiB physical -> allow large tiles / deep double-buffering.
        return 96 * 1024 * 1024
    return 32 * 1024 * 1024  # safe default


def linear_kernel(x_ref, wt_ref, b_ref, o_ref, acc_ref):
    # x_ref: (tm, tk)   wt_ref: (tk, tn)   b_ref: (1, tn) f32
    # o_ref: (tm, tn)   acc_ref: (tm, tn) f32 scratch (persists across K steps)
    k = pl.program_id(2)

    @pl.when(k == 0)
    def _():
        # Fold the bias into the accumulator init: saves a full-tile VPU add and
        # an extra accumulator read in the store-bound epilogue.
        acc_ref[...] = jnp.broadcast_to(b_ref[...], acc_ref.shape)

    # Pre-transposed weight: MXU-direct dot, no in-kernel transpose / XLU work.
    acc_ref[...] += jnp.dot(
        x_ref[...], wt_ref[...], preferred_element_type=jnp.float32
    )

    @pl.when(k == pl.num_programs(2) - 1)
    def _():
        o_ref[...] = acc_ref[...].astype(o_ref.dtype)


def prepare_linear_params(weight, bias, *, compute_dtype=None, tn=None, tk=None):
    """One-time parameter prep: pad + transpose + cast the weight to [K_pad, N_pad].

    Call this once at parameter-init time; reuse the result across forward calls.
    """
    D_out, D_in = weight.shape
    if compute_dtype is None:
        compute_dtype = weight.dtype  # pass jnp.bfloat16 for MXU-rate operands

    n_pad0 = _round_up(D_out, 128)
    k_pad0 = _round_up(D_in, 128)

    # Default tiles: large (fewer grid steps / operand re-reads), 128-aligned.
    tn = tn or min(512, n_pad0)
    tk = tk or min(1024, k_pad0)
    assert tn % 128 == 0, "tn must be a multiple of 128"
    assert tk % 128 == 0, "tk must be a multiple of 128"

    n_pad = _round_up(n_pad0, tn)
    k_pad = _round_up(k_pad0, tk)

    wt_p = (
        jnp.zeros((k_pad, n_pad), compute_dtype)
        .at[:D_in, :D_out]
        .set(weight.T.astype(compute_dtype))
    )
    b_p = (
        jnp.zeros((1, n_pad), jnp.float32)
        .at[0, :D_out]
        .set(bias.astype(jnp.float32))
    )
    return {
        "wt_p": wt_p,
        "b_p": b_p,
        "D_in": D_in,
        "D_out": D_out,
        "tn": tn,
        "tk": tk,
        "compute_dtype": jnp.dtype(compute_dtype),
    }


def linear_apply(x, params, *, tm=None, out_dtype=None):
    """y = x @ weight.T + bias using pre-prepared (padded, transposed) params."""
    B, D_in = x.shape
    assert D_in == params["D_in"], "input_dim mismatch with prepared params"

    compute_dtype = params["compute_dtype"]
    wt_p, b_p = params["wt_p"], params["b_p"]
    tn, tk = params["tn"], params["tk"]
    k_pad, n_pad = wt_p.shape
    D_out = params["D_out"]
    out_dtype = out_dtype or x.dtype

    # bf16 packs 16 sublanes per vreg; round the batch grain accordingly.
    m_grain = 16 if compute_dtype == jnp.dtype(jnp.bfloat16) else 8
    m_pad = _round_up(B, m_grain)
    tm = tm or min(512, m_pad)
    assert tm % m_grain == 0, f"tm must be a multiple of {m_grain}"
    m_pad = _round_up(m_pad, tm)

    # Fast path: skip the x padding copy when already aligned & in compute dtype.
    if m_pad == B and k_pad == D_in and x.dtype == compute_dtype:
        x_p = x
    else:
        x_p = (
            jnp.zeros((m_pad, k_pad), compute_dtype)
            .at[:B, :D_in]
            .set(x.astype(compute_dtype))
        )

    grid_m = m_pad // tm
    # Megacore (v7x has 2 TensorCores): if the M axis has only one block, split N
    # into >=2 blocks so a parallel grid axis can be sharded across cores.
    tn_eff = tn
    if grid_m == 1 and n_pad // tn == 1 and tn >= 256 and (tn // 2) % 128 == 0:
        tn_eff = tn // 2
    grid_n = n_pad // tn_eff
    grid_k = k_pad // tk
    grid = (grid_m, grid_n, grid_k)

    item = compute_dtype.itemsize
    cost = pl.CostEstimate(
        flops=2 * m_pad * n_pad * k_pad,
        transcendentals=0,
        bytes_accessed=(
            m_pad * k_pad * item * grid_n          # x re-read once per N block
            + k_pad * n_pad * item * grid_m        # W re-read once per M block
            + n_pad * 4 * grid_m                   # bias
            + m_pad * n_pad * jnp.dtype(out_dtype).itemsize  # out
        ),
    )

    out_padded = pl.pallas_call(
        linear_kernel,
        out_shape=jax.ShapeDtypeStruct((m_pad, n_pad), out_dtype),
        grid_spec=pltpu.PrefetchScalarGridSpec(
            num_scalar_prefetch=0,
            grid=grid,
            in_specs=[
                pl.BlockSpec((tm, tk), lambda i, j, k: (i, k)),      # x tile
                pl.BlockSpec((tk, tn_eff), lambda i, j, k: (k, j)),  # W.T tile
                pl.BlockSpec((1, tn_eff), lambda i, j, k: (0, j)),   # bias tile
            ],
            out_specs=pl.BlockSpec((tm, tn_eff), lambda i, j, k: (i, j)),
            scratch_shapes=[pltpu.VMEM((tm, tn_eff), jnp.float32)],
        ),
        compiler_params=pltpu.CompilerParams(
            dimension_semantics=("parallel", "parallel", "arbitrary"),
            vmem_limit_bytes=_vmem_budget_bytes(),
        ),
        cost_estimate=cost,
    )(x_p, wt_p, b_p)

    # Slice the zero padding back off outside the kernel.
    return out_padded[:B, :D_out]


def linear_forward(x, weight, bias, *, compute_dtype=None):
    """Convenience one-shot wrapper (prep + apply). Prefer prepare+apply for reuse."""
    params = prepare_linear_params(weight, bias, compute_dtype=compute_dtype)
    return linear_apply(x, params)


if __name__ == "__main__":
    key = jax.random.PRNGKey(0)
    k_x, k_w, k_b, k_x2 = jax.random.split(key, 4)

    batch = 8
    input_dim = 32
    output_dim = 16

    x = jax.random.normal(k_x, (batch, input_dim), dtype=jnp.float32)
    bound = 1.0 / (input_dim ** 0.5)
    weight = jax.random.uniform(
        k_w, (output_dim, input_dim), dtype=jnp.float32, minval=-bound, maxval=bound
    )
    bias = jax.random.uniform(
        k_b, (output_dim,), dtype=jnp.float32, minval=-bound, maxval=bound
    )

    ref = x @ weight.T + bias

    # f32 path: params prepared once, reused across calls (hoisted weight prep).
    params_f32 = prepare_linear_params(weight, bias)
    out = jax.block_until_ready(linear_apply(x, params_f32))
    out_again = jax.block_until_ready(linear_apply(x, params_f32))  # reuse, no re-prep
    assert out.shape == (batch, output_dim)
    assert jnp.allclose(out, ref, atol=1e-5, rtol=1e-5)
    assert jnp.allclose(out_again, ref, atol=1e-5, rtol=1e-5)

    # bf16 operand path (MXU-rate operands, f32 accumulation) — looser tolerance.
    params_bf16 = prepare_linear_params(weight, bias, compute_dtype=jnp.bfloat16)
    out_bf16 = jax.block_until_ready(linear_apply(x, params_bf16))
    assert out_bf16.shape == (batch, output_dim)
    assert jnp.allclose(out_bf16, ref, atol=5e-2, rtol=5e-2)

    # Aligned-shape case exercising the no-copy fast path for x.
    B2, D_in2, D_out2 = 128, 256, 128
    x2 = jax.random.normal(k_x2, (B2, D_in2), dtype=jnp.float32)
    w2 = jax.random.normal(k_w, (D_out2, D_in2), dtype=jnp.float32) * 0.05
    b2 = jax.random.normal(k_b, (D_out2,), dtype=jnp.float32) * 0.05
    params2 = prepare_linear_params(w2, b2)
    out2 = jax.block_until_ready(linear_apply(x2, params2))
    ref2 = x2 @ w2.T + b2
    assert jnp.allclose(out2, ref2, atol=1e-4, rtol=1e-4)

    print("KERNEL_OK")
</pallas_src>

<mosaic_0001>
module attributes {stable_mosaic.version = 11 : i64} {
  func.func @linear_kernel(%arg0: i32, %arg1: i32, %arg2: i32, %arg3: memref<8x128xf32, #tpu.memory_space<vmem>>, %arg4: memref<128x128xf32, #tpu.memory_space<vmem>>, %arg5: memref<1x128xf32, #tpu.memory_space<vmem>>, %arg6: memref<8x128xf32, #tpu.memory_space<vmem>>, %arg7: memref<8x128xf32, #tpu.memory_space<vmem>>) attributes {dimension_semantics = [#tpu.dimension_semantics<parallel>, #tpu.dimension_semantics<parallel>, #tpu.dimension_semantics<arbitrary>], iteration_bounds = array<i64: 1, 1, 1>, scalar_prefetch = 0 : i64, scratch_operands = 1 : i64, tpu.core_type = #tpu.core_type<tc>, window_params = [{transform_indices = @transform_0, window_bounds = array<i64: 8, 128>}, {transform_indices = @transform_1, window_bounds = array<i64: 128, 128>}, {transform_indices = @transform_2, window_bounds = array<i64: 1, 128>}, {transform_indices = @transform_3, window_bounds = array<i64: 8, 128>}]} {
    %c0_i32 = arith.constant 0 : i32
    %0 = arith.cmpi eq, %arg2, %c0_i32 : i32
    %1 = arith.extui %0 : i1 to i32
    %c0_i32_0 = arith.constant 0 : i32
    %2 = arith.cmpi ne, %1, %c0_i32_0 : i32
    scf.if %2 {
      %c0_10 = arith.constant 0 : index
      %c0_11 = arith.constant 0 : index
      %12 = vector.load %arg5[%c0_10, %c0_11] : memref<1x128xf32, #tpu.memory_space<vmem>>, vector<1x128xf32>
      %13 = vector.shape_cast %12 : vector<1x128xf32> to vector<1x128xf32>
      %14 = vector.broadcast %13 : vector<1x128xf32> to vector<8x128xf32>
      %c0_12 = arith.constant 0 : index
      %c0_13 = arith.constant 0 : index
      %15 = vector.load %arg7[%c0_12, %c0_13] : memref<8x128xf32, #tpu.memory_space<vmem>>, vector<8x128xf32>
      tpu.vector_store %arg7[%c0_12, %c0_13], %14 {strides = array<i32>} : memref<8x128xf32, #tpu.memory_space<vmem>>, vector<8x128xf32>,
    } else {
    }
    %c0 = arith.constant 0 : index
    %c0_1 = arith.constant 0 : index
    %3 = vector.load %arg7[%c0, %c0_1] : memref<8x128xf32, #tpu.memory_space<vmem>>, vector<8x128xf32>
    %c0_2 = arith.constant 0 : index
    %c0_3 = arith.constant 0 : index
    %4 = vector.load %arg3[%c0_2, %c0_3] : memref<8x128xf32, #tpu.memory_space<vmem>>, vector<8x128xf32>
    %c0_4 = arith.constant 0 : index
    %c0_5 = arith.constant 0 : index
    %5 = vector.load %arg4[%c0_4, %c0_5] : memref<128x128xf32, #tpu.memory_space<vmem>>, vector<128x128xf32>
    %cst = arith.constant dense<0.000000e+00> : vector<8x128xf32>
    %6 = tpu.matmul %4, %5, %cst {dimension_numbers = #tpu.dot_dimension_numbers<[1], [0], [0], [1], [0, 0, 1, 1], [], []>} : vector<8x128xf32>, vector<128x128xf32>, vector<8x128xf32> -> vector<8x128xf32>
    %7 = arith.addf %3, %6 : vector<8x128xf32>
    %c0_6 = arith.constant 0 : index
    %c0_7 = arith.constant 0 : index
    %8 = vector.load %arg7[%c0_6, %c0_7] : memref<8x128xf32, #tpu.memory_space<vmem>>, vector<8x128xf32>
    tpu.vector_store %arg7[%c0_6, %c0_7], %7 {strides = array<i32>} : memref<8x128xf32, #tpu.memory_space<vmem>>, vector<8x128xf32>,
    %c0_i32_8 = arith.constant 0 : i32
    %9 = arith.cmpi eq, %arg2, %c0_i32_8 : i32
    %10 = arith.extui %9 : i1 to i32
    %c0_i32_9 = arith.constant 0 : i32
    %11 = arith.cmpi ne, %10, %c0_i32_9 : i32
    scf.if %11 {
      %c0_10 = arith.constant 0 : index
      %c0_11 = arith.constant 0 : index
      %12 = vector.load %arg7[%c0_10, %c0_11] : memref<8x128xf32, #tpu.memory_space<vmem>>, vector<8x128xf32>
      %c0_12 = arith.constant 0 : index
      %c0_13 = arith.constant 0 : index
      %13 = vector.load %arg6[%c0_12, %c0_13] : memref<8x128xf32, #tpu.memory_space<vmem>>, vector<8x128xf32>
      tpu.vector_store %arg6[%c0_12, %c0_13], %12 {strides = array<i32>} : memref<8x128xf32, #tpu.memory_space<vmem>>, vector<8x128xf32>,
    } else {
    }
    return
  }
  func.func @transform_0(%arg0: i32, %arg1: i32, %arg2: i32) -> (i32, i32) {
    %c0_i32 = arith.constant 0 : i32
    return %arg0, %arg2 : i32, i32
  }
  func.func @transform_1(%arg0: i32, %arg1: i32, %arg2: i32) -> (i32, i32) {
    %c0_i32 = arith.constant 0 : i32
    return %arg2, %arg1 : i32, i32
  }
  func.func @transform_2(%arg0: i32, %arg1: i32, %arg2: i32) -> (i32, i32) {
    %c0_i32 = arith.constant 0 : i32
    %c0_i32_0 = arith.constant 0 : i32
    return %c0_i32, %arg1 : i32, i32
  }
  func.func @transform_3(%arg0: i32, %arg1: i32, %arg2: i32) -> (i32, i32) {
    %c0_i32 = arith.constant 0 : i32
    return %arg0, %arg1 : i32, i32
  }
}

</mosaic_0001>

<bundles_post_ra>
// kernel: tpu_custom_call.1
= control target key start
LH: loop header
LB: loop body
LE: loop exit
PB: predicated region body
PF: predicated region fallthrough
CT: control target
= control target key end

     0   :  { %8 = vsyncpa [#allocation4], 0  ;;  %s329_s0 = inlined_call_operand.hbm [shape: f32[8,128], index: 0, kind: input, shape index: {}]   ;;  %s330_s1 = inlined_call_operand.hbm [shape: f32[128,128], index: 1, kind: input, shape index: {}]   ;;  %s331_s2 = inlined_call_operand.vmem [shape: f32[1,128], index: 2, kind: input, shape index: {}]   ;;  %s332_s3 = inlined_call_operand.hbm [shape: f32[8,128], index: 3, kind: output, shape index: {}]  }
   0x1   :  { %9 = vsyncpa [#allocation7], 0 }
   0x2   :  { %10 = vsyncpa [#allocation5], 0  ;;  %s290_s12 = smov [#allocation3]   ;;  %s291_s14 = smov [#allocation6]  }
   0x3   :  { %s17_s13 = sshll.u32 %s290_s12, 4  ;;  %s26_s15 = sshll.u32 %s291_s14, 4  ;;  %s18_s13 = int_to_ptr.vmem [resolvable:$true] %s17_s13  ;;  %s27_s15 = int_to_ptr.vmem [resolvable:$true] %s26_s15 }
   0x4   :  { %s232_s16 = scalar_lea.vmem %s18_s13, 128  ;;  %p237_p1 = scmp.lt.s32.totalorder %s18_s13, %s18_s13 }
   0x5   :  { %p233_p0 = scmp.ne.s32.totalorder %s18_s13, %s232_s16  ;;  %p238_p2 = scmp.lt.s32.totalorder %s232_s16, %s232_s16 }
   0x7   :  { %p239_p3 = por %p238_p2, %p237_p1 }
   0x9   :  { %p240_p4 = pnand %p239_p3, %p233_p0 }
   0xb   :  { %243 = shalt.err (!%p240_p4)
}
   0xc   :  { %20 = dma.hbm_to_vmem [thread:$0]  %s329_s0, 128, %s18_s13, [#allocation4]  }
   0xd   :  { %s252_s19 = scalar_lea.vmem %s27_s15, 2048  ;;  %p257_p6 = scmp.lt.s32.totalorder %s27_s15, %s27_s15 }
   0xe   :  { %p253_p5 = scmp.ne.s32.totalorder %s27_s15, %s252_s19  ;;  %p258_p7 = scmp.lt.s32.totalorder %s252_s19, %s252_s19 }
  0x10   :  { %p259_p8 = por %p258_p7, %p257_p6 }
  0x12   :  { %p260_p9 = pnand %p259_p8, %p253_p5 }
  0x14   :  { %263 = shalt.err (!%p260_p9)
}
  0x15   :  { %s292_s20 = smov 128   ;;  %s293_s21 = smov 8  }
  0x16   :  { %32 = dma.hbm_to_vmem [thread:$0]  %s330_s1, 2048, %s27_s15, [#allocation7], %s292_s20, %s292_s20, %s293_s21  }
  0x17   :  { %284 = dma.done.wait [#allocation4], 128  }
  0x18   :  { %285 = vsyncadd [#allocation4], 4294967168 }
  0x19   :  { %286 = dma.done.wait [#allocation7], 2048  }
  0x1a   :  { %287 = vsyncadd [#allocation7], 4294965248  ;;  %v294_v0 = vmov 0.0   ;;  %vm295_vm0 = vmmov 0   ;;  %v70_v1 = vld [vmem:[#allocation6 + $0x78] sm:$0xff]  ;;  %v69_v2 = vld [vmem:[#allocation6 + $0x70] sm:$0xff] }
  0x1b   :  { %182 = vmatprep.subr.mxu0 %v294_v0  ;;  %214 = vmatprep.mubr.msk.f32.mxu0 %vm295_vm0, %v294_v0  ;;  %v68_v3 = vld [vmem:[#allocation6 + $0x68] sm:$0xff]  ;;  %v67_v4 = vld [vmem:[#allocation6 + $0x60] sm:$0xff]  ;;  %v66_v5 = vld [vmem:[#allocation6 + $0x58] sm:$0xff]  ;;  %s296_s24 = smov [#allocation8]  }
  0x1c   :  { %183 = vmatpush3.msra.mxu0 %v70_v1  ;;  %v65_v6 = vld [vmem:[#allocation6 + $0x50] sm:$0xff]  ;;  %v64_v7 = vld [vmem:[#allocation6 + $0x48] sm:$0xff]  ;;  %v63_v8 = vld [vmem:[#allocation6 + $0x40] sm:$0xff]  ;;  %s154_s25 = sshll.u32 %s296_s24, 4  ;;  %s155_s25 = int_to_ptr.vmem [resolvable:$true] %s154_s25 }
  0x1d   :  { %184 = vmatprep.subr.mxu0 %v294_v0  ;;  %v62_v9 = vld [vmem:[#allocation6 + $0x38] sm:$0xff]  ;;  %v61_v10 = vld [vmem:[#allocation6 + $0x30] sm:$0xff]  ;;  %v60_v11 = vld [vmem:[#allocation6 + $0x28] sm:$0xff]  ;;  %s264_s26 = scalar_lea.vmem %s155_s25, 128  ;;  %p269_p11 = scmp.lt.s32.totalorder %s155_s25, %s155_s25 }
  0x1e   :  { %185 = vmatpush3.msra.mxu0 %v69_v2  ;;  %v59_v12 = vld [vmem:[#allocation6 + $0x20] sm:$0xff]  ;;  %v58_v13 = vld [vmem:[#allocation6 + $0x18] sm:$0xff]  ;;  %v57_v14 = vld [vmem:[#allocation6 + $0x10] sm:$0xff]  ;;  %p265_p10 = scmp.ne.s32.totalorder %s155_s25, %s264_s26  ;;  %p270_p12 = scmp.lt.s32.totalorder %s264_s26, %s264_s26 }
  0x1f   :  { %186 = vmatprep.subr.mxu0 %v294_v0  ;;  %v56_v15 = vld [vmem:[#allocation6 + $0x8] sm:$0xff]  ;;  %v55_v16 = vld [vmem:[#allocation6] sm:$0xff]  ;;  %v54_v17 = vld [vmem:[#allocation3] sm:$0xff] }
  0x20   :  { %187 = vmatpush3.msra.mxu0 %v68_v3  ;;  %v164_v18 = vld [vmem:[%s331_s2] ss:$0 sm:$0xff]  ;;  %p271_p13 = por %p270_p12, %p269_p11 }
  0x21   :  { %188 = vmatprep.subr.mxu0 %v294_v0 }
  0x22   :  { %189 = vmatpush3.msra.mxu0 %v67_v4  ;;  %p272_p0 = pnand %p271_p13, %p265_p10 }
  0x23   :  { %190 = vmatprep.subr.mxu0 %v294_v0 }
  0x24   :  { %191 = vmatpush3.msra.mxu0 %v66_v5 }
  0x25   :  { %192 = vmatprep.subr.mxu0 %v294_v0 }
  0x26   :  { %193 = vmatpush3.msra.mxu0 %v65_v6 }
  0x27   :  { %194 = vmatprep.subr.mxu0 %v294_v0 }
  0x28   :  { %195 = vmatpush3.msra.mxu0 %v64_v7 }
  0x29   :  { %196 = vmatprep.subr.mxu0 %v294_v0 }
  0x2a   :  { %197 = vmatpush3.msra.mxu0 %v63_v8 }
  0x2b   :  { %198 = vmatprep.subr.mxu0 %v294_v0 }
  0x2c   :  { %199 = vmatpush3.msra.mxu0 %v62_v9 }
  0x2d   :  { %200 = vmatprep.subr.mxu0 %v294_v0 }
  0x2e   :  { %201 = vmatpush3.msra.mxu0 %v61_v10 }
  0x2f   :  { %202 = vmatprep.subr.mxu0 %v294_v0 }
  0x30   :  { %203 = vmatpush3.msra.mxu0 %v60_v11 }
  0x31   :  { %204 = vmatprep.subr.mxu0 %v294_v0 }
  0x32   :  { %205 = vmatpush3.msra.mxu0 %v59_v12 }
  0x33   :  { %206 = vmatprep.subr.mxu0 %v294_v0 }
  0x34   :  { %207 = vmatpush3.msra.mxu0 %v58_v13 }
  0x35   :  { %208 = vmatprep.subr.mxu0 %v294_v0 }
  0x36   :  { %209 = vmatpush3.msra.mxu0 %v57_v14 }
  0x37   :  { %210 = vmatprep.subr.mxu0 %v294_v0 }
  0x38   :  { %211 = vmatpush3.msra.mxu0 %v56_v15 }
  0x39   :  { %212 = vmatprep.subr.mxu0 %v294_v0 }
  0x3a   :  { %213 = vmatpush3.msra.mxu0 %v55_v16 }
  0x3b   :  { %215 = vmatmul.mubr.f32.vlgmr.msra.gmra.mxu0 %v54_v17 }
  0xfb   :  { %v137_v19 = vpop.f32.mrf.mxu0 }
  0xfc   :  { %v141_v20 = vadd.f32 %v164_v18, %v137_v19 }
  0xfd   :  { %v216_v21 = vpop.f32.mrf.mxu0 }
  0xfe   :  { %147 = vst [vmem:[#allocation8] sm:$0xff] %v141_v20 }
  0xff   :  { %275 = shalt.err (!%p272_p0)
}
 0x100   :  { %157 = dma.vmem_to_hbm [thread:$0]  %s155_s25, 128, %s332_s3, [#allocation5]  }
 0x101   :  { %288 = dma.done.wait [#allocation5], 128  }
 0x102   :  { %289 = vsyncadd [#allocation5], 4294967168 }
 0x103   :  { %161 = vsyncpa [#allocation4], 1 }
 0x104   :  { %162 = vsyncpa [#allocation7], 1 }
 0x105   :  { %163 = vsyncpa [#allocation5], 1 }

</bundles_post_ra>
